<compile_context>
chip_gen: v7x
topology: tpu7x:2x2x1
jax: 0.10.0
libtpu: 0.0.40
codegen_flags: <defaults>
</compile_context>

<pallas_src>
import functools
import math

import jax
import jax.numpy as jnp
from jax.experimental import pallas as pl
from jax.experimental.pallas import tpu as pltpu

_LANES = 128
_SUBLANES = 8
_TARGET_BLOCK_BYTES = 2 << 20  # ~2 MiB per block -> ~8 MiB double-buffered in+out


def _pick_block_rows(n_rows, row_width, itemsize, block_rows=None):
    """Largest 8-aligned row tile ~_TARGET_BLOCK_BYTES that still gives >=2 grid steps."""
    if block_rows is not None:
        br = min(int(block_rows), n_rows)
    else:
        br = max(1, _TARGET_BLOCK_BYTES // (row_width * itemsize))
        # Keep at least 2 grid steps for non-trivial inputs so both v7x TCs stream.
        if n_rows > 2 * _SUBLANES:
            br = min(br, -(-n_rows // 2))
    if br >= n_rows:
        return n_rows  # single block equal to the full dim is always legal
    return max(_SUBLANES, (br // _SUBLANES) * _SUBLANES)


def _norm_kernel_packed(x_ref, alpha_ref, bias_ref, seg_ref, o_ref, *, eps, d_model):
    # x_ref: (br, 128) with k = 128 // d_model logical rows packed per lane-row.
    # seg_ref: (128, 128) block-diagonal ones matrix -> per-segment sums via MXU,
    # keeping everything lane-dense (no cross-lane XLU reductions, no masked stores).
    x = x_ref[...].astype(jnp.float32)
    seg = seg_ref[...]
    n = jnp.float32(d_model)
    mean = jnp.dot(x, seg, preferred_element_type=jnp.float32) / n
    xc = x - mean
    var = jnp.dot(xc * xc, seg, preferred_element_type=jnp.float32) / jnp.float32(d_model - 1)
    inv = pl.reciprocal(jnp.sqrt(var) + jnp.float32(eps), approx=False)
    alpha = alpha_ref[...].astype(jnp.float32)  # (1, 128): params tiled k times
    bias = bias_ref[...].astype(jnp.float32)
    o_ref[...] = (xc * (alpha * inv) + bias).astype(o_ref.dtype)


def _norm_kernel(x_ref, alpha_ref, bias_ref, o_ref, *, eps, d_model):
    # x_ref: (br, d_model); fused single-pass sum / sum-of-squares statistics.
    x = x_ref[...].astype(jnp.float32)
    n = jnp.float32(d_model)
    s = jnp.sum(x, axis=-1, keepdims=True)
    ss = jnp.sum(x * x, axis=-1, keepdims=True)
    mean = s / n
    var = (ss - s * mean) / jnp.float32(d_model - 1)
    std = jnp.sqrt(jnp.maximum(var, 0.0))
    inv = pl.reciprocal(std + jnp.float32(eps), approx=False)
    alpha = alpha_ref[...].astype(jnp.float32)
    bias = bias_ref[...].astype(jnp.float32)
    o_ref[...] = ((x - mean) * (alpha * inv) + bias).astype(o_ref.dtype)


def norm_pallas(x, alpha, bias, eps=1e-6, block_rows=None):
    """Pallas implementation of Norm.forward (normalizes the last dim)."""
    orig_shape = x.shape
    d_model = orig_shape[-1]
    rows = int(math.prod(orig_shape[:-1]))
    x2 = x.reshape(rows, d_model)
    itemsize = jnp.dtype(x.dtype).itemsize

    compiler_params = pltpu.CompilerParams(
        dimension_semantics=("parallel",),
        vmem_limit_bytes=32 * 1024 * 1024,  # tiles sized well under this on all gens
    )

    if d_model < _LANES and _LANES % d_model == 0:
        # Lane-dense packed path for small d_model: k rows per 128-lane vreg row.
        k = _LANES // d_model
        rows_p = -(-rows // k) * k
        if rows_p != rows:
            x2 = jnp.pad(x2, ((0, rows_p - rows), (0, 0)))
        n_rows = rows_p // k
        xp = x2.reshape(n_rows, _LANES)
        alpha_p = jnp.tile(alpha.reshape(1, d_model).astype(jnp.float32), (1, k))
        bias_p = jnp.tile(bias.reshape(1, d_model).astype(jnp.float32), (1, k))
        ids = jnp.arange(_LANES, dtype=jnp.int32) // d_model
        seg = (ids[:, None] == ids[None, :]).astype(jnp.float32)

        br = _pick_block_rows(n_rows, _LANES, itemsize, block_rows)
        kernel = functools.partial(_norm_kernel_packed, eps=eps, d_model=d_model)
        out = pl.pallas_call(
            kernel,
            out_shape=jax.ShapeDtypeStruct((n_rows, _LANES), x.dtype),
            grid_spec=pltpu.PrefetchScalarGridSpec(
                num_scalar_prefetch=0,
                grid=(pl.cdiv(n_rows, br),),
                in_specs=[
                    pl.BlockSpec((br, _LANES), lambda i: (i, 0)),
                    pl.BlockSpec((1, _LANES), lambda i: (0, 0)),
                    pl.BlockSpec((1, _LANES), lambda i: (0, 0)),
                    pl.BlockSpec((_LANES, _LANES), lambda i: (0, 0)),
                ],
                out_specs=pl.BlockSpec((br, _LANES), lambda i: (i, 0)),
            ),
            compiler_params=compiler_params,
        )(xp, alpha_p, bias_p, seg)
        out = out.reshape(rows_p, d_model)[:rows]
        return out.reshape(orig_shape)

    # General path: full-width d_model in the lane dim (best when d_model % 128 == 0).
    alpha2 = alpha.reshape(1, d_model).astype(jnp.float32)
    bias2 = bias.reshape(1, d_model).astype(jnp.float32)
    br = _pick_block_rows(rows, d_model, itemsize, block_rows)
    kernel = functools.partial(_norm_kernel, eps=eps, d_model=d_model)
    out = pl.pallas_call(
        kernel,
        out_shape=jax.ShapeDtypeStruct((rows, d_model), x.dtype),
        grid_spec=pltpu.PrefetchScalarGridSpec(
            num_scalar_prefetch=0,
            grid=(pl.cdiv(rows, br),),
            in_specs=[
                pl.BlockSpec((br, d_model), lambda i: (i, 0)),
                pl.BlockSpec((1, d_model), lambda i: (0, 0)),
                pl.BlockSpec((1, d_model), lambda i: (0, 0)),
            ],
            out_specs=pl.BlockSpec((br, d_model), lambda i: (i, 0)),
        ),
        compiler_params=compiler_params,
    )(x2, alpha2, bias2)
    return out.reshape(orig_shape)


def norm_reference(x, alpha, bias, eps=1e-6):
    """Plain-JAX reference matching the PyTorch forward exactly."""
    xf = x.astype(jnp.float32)
    mean = jnp.mean(xf, axis=-1, keepdims=True)
    var = jnp.sum((xf - mean) ** 2, axis=-1, keepdims=True) / (x.shape[-1] - 1)
    std = jnp.sqrt(var)
    return (alpha * (xf - mean) / (std + eps) + bias).astype(x.dtype)


if __name__ == "__main__":
    eps = 1e-6
    key = jax.random.PRNGKey(0)
    k1, k2 = jax.random.split(key)

    # Case 1: small d_model=32 -> lane-packed path (4 logical rows per vreg row).
    d_model = 32
    batch, seq = 2, 8
    x = jax.random.normal(k1, (batch, seq, d_model), dtype=jnp.float32)
    alpha = jnp.ones((d_model,), dtype=jnp.float32)   # Norm.__init__ init
    bias = jnp.zeros((d_model,), dtype=jnp.float32)
    out = jax.block_until_ready(norm_pallas(x, alpha, bias, eps=eps))
    ref = norm_reference(x, alpha, bias, eps=eps)
    assert out.shape == x.shape
    assert jnp.allclose(out, ref, atol=1e-5, rtol=1e-5), "packed-path mismatch"

    # Case 2: d_model=128, awkward row count (21) -> general path, cdiv grid with
    # a partial last block (exercises clipped writeback of out-of-range rows).
    d_model2 = 128
    x2 = jax.random.normal(k2, (3, 7, d_model2), dtype=jnp.float32)
    alpha2 = 1.0 + 0.1 * jnp.arange(d_model2, dtype=jnp.float32) / d_model2
    bias2 = 0.01 * jnp.arange(d_model2, dtype=jnp.float32)
    out2 = jax.block_until_ready(norm_pallas(x2, alpha2, bias2, eps=eps))
    ref2 = norm_reference(x2, alpha2, bias2, eps=eps)
    assert out2.shape == x2.shape
    assert jnp.allclose(out2, ref2, atol=1e-5, rtol=1e-5), "general-path mismatch"

    print("KERNEL_OK")
</pallas_src>

<mosaic_0001>
module attributes {stable_mosaic.version = 11 : i64} {
  func.func @_norm_kernel_packed(%arg0: i32, %arg1: memref<4x128xf32, #tpu.memory_space<vmem>>, %arg2: memref<1x128xf32, #tpu.memory_space<vmem>>, %arg3: memref<1x128xf32, #tpu.memory_space<vmem>>, %arg4: memref<128x128xf32, #tpu.memory_space<vmem>>, %arg5: memref<4x128xf32, #tpu.memory_space<vmem>>) attributes {dimension_semantics = [#tpu.dimension_semantics<parallel>], iteration_bounds = array<i64: 1>, scalar_prefetch = 0 : i64, scratch_operands = 0 : i64, tpu.core_type = #tpu.core_type<tc>, window_params = [{transform_indices = @transform_0, window_bounds = array<i64: 4, 128>}, {pipeline_mode = #tpu.pipeline_mode<synchronous>, transform_indices = @transform_1, window_bounds = array<i64: 1, 128>}, {pipeline_mode = #tpu.pipeline_mode<synchronous>, transform_indices = @transform_2, window_bounds = array<i64: 1, 128>}, {pipeline_mode = #tpu.pipeline_mode<synchronous>, transform_indices = @transform_3, window_bounds = array<i64: 128, 128>}, {transform_indices = @transform_4, window_bounds = array<i64: 4, 128>}]} {
    %c0 = arith.constant 0 : index
    %c0_0 = arith.constant 0 : index
    %0 = vector.load %arg1[%c0, %c0_0] : memref<4x128xf32, #tpu.memory_space<vmem>>, vector<4x128xf32>
    %c0_1 = arith.constant 0 : index
    %c0_2 = arith.constant 0 : index
    %1 = vector.load %arg4[%c0_1, %c0_2] : memref<128x128xf32, #tpu.memory_space<vmem>>, vector<128x128xf32>
    %cst = arith.constant dense<0.000000e+00> : vector<4x128xf32>
    %2 = tpu.matmul %0, %1, %cst {dimension_numbers = #tpu.dot_dimension_numbers<[1], [0], [0], [1], [0, 0, 1, 1], [], []>} : vector<4x128xf32>, vector<128x128xf32>, vector<4x128xf32> -> vector<4x128xf32>
    %cst_3 = arith.constant 3.200000e+01 : f32
    %3 = vector.broadcast %cst_3 : f32 to vector<4x128xf32>
    %4 = arith.divf %2, %3 : vector<4x128xf32>
    %5 = arith.subf %0, %4 : vector<4x128xf32>
    %6 = arith.mulf %5, %5 : vector<4x128xf32>
    %cst_4 = arith.constant dense<0.000000e+00> : vector<4x128xf32>
    %7 = tpu.matmul %6, %1, %cst_4 {dimension_numbers = #tpu.dot_dimension_numbers<[1], [0], [0], [1], [0, 0, 1, 1], [], []>} : vector<4x128xf32>, vector<128x128xf32>, vector<4x128xf32> -> vector<4x128xf32>
    %cst_5 = arith.constant 3.100000e+01 : f32
    %8 = vector.broadcast %cst_5 : f32 to vector<4x128xf32>
    %9 = arith.divf %7, %8 : vector<4x128xf32>
    %10 = math.sqrt %9 : vector<4x128xf32>
    %cst_6 = arith.constant 9.99999997E-7 : f32
    %11 = vector.broadcast %cst_6 : f32 to vector<4x128xf32>
    %12 = arith.addf %10, %11 : vector<4x128xf32>
    %13 = tpu.reciprocal %12 : vector<4x128xf32> -> vector<4x128xf32>
    %c0_7 = arith.constant 0 : index
    %c0_8 = arith.constant 0 : index
    %14 = vector.load %arg2[%c0_7, %c0_8] : memref<1x128xf32, #tpu.memory_space<vmem>>, vector<1x128xf32>
    %c0_9 = arith.constant 0 : index
    %c0_10 = arith.constant 0 : index
    %15 = vector.load %arg3[%c0_9, %c0_10] : memref<1x128xf32, #tpu.memory_space<vmem>>, vector<1x128xf32>
    %16 = vector.broadcast %14 : vector<1x128xf32> to vector<4x128xf32>
    %17 = arith.mulf %16, %13 : vector<4x128xf32>
    %18 = arith.mulf %5, %17 : vector<4x128xf32>
    %19 = vector.broadcast %15 : vector<1x128xf32> to vector<4x128xf32>
    %20 = arith.addf %18, %19 : vector<4x128xf32>
    %c0_11 = arith.constant 0 : index
    %c0_12 = arith.constant 0 : index
    %21 = vector.load %arg5[%c0_11, %c0_12] : memref<4x128xf32, #tpu.memory_space<vmem>>, vector<4x128xf32>
    tpu.vector_store %arg5[%c0_11, %c0_12], %20 {strides = array<i32>} : memref<4x128xf32, #tpu.memory_space<vmem>>, vector<4x128xf32>,
    return
  }
  func.func @transform_0(%arg0: i32) -> (i32, i32) {
    %c0_i32 = arith.constant 0 : i32
    %c0_i32_0 = arith.constant 0 : i32
    return %arg0, %c0_i32 : i32, i32
  }
  func.func @transform_1(%arg0: i32) -> (i32, i32) {
    %c0_i32 = arith.constant 0 : i32
    %c0_i32_0 = arith.constant 0 : i32
    %c0_i32_1 = arith.constant 0 : i32
    return %c0_i32, %c0_i32_0 : i32, i32
  }
  func.func @transform_2(%arg0: i32) -> (i32, i32) {
    %c0_i32 = arith.constant 0 : i32
    %c0_i32_0 = arith.constant 0 : i32
    %c0_i32_1 = arith.constant 0 : i32
    return %c0_i32, %c0_i32_0 : i32, i32
  }
  func.func @transform_3(%arg0: i32) -> (i32, i32) {
    %c0_i32 = arith.constant 0 : i32
    %c0_i32_0 = arith.constant 0 : i32
    %c0_i32_1 = arith.constant 0 : i32
    return %c0_i32, %c0_i32_0 : i32, i32
  }
  func.func @transform_4(%arg0: i32) -> (i32, i32) {
    %c0_i32 = arith.constant 0 : i32
    %c0_i32_0 = arith.constant 0 : i32
    return %arg0, %c0_i32 : i32, i32
  }
}

</mosaic_0001>

<bundles_post_ra>
// kernel: tpu_custom_call.1
= control target key start
LH: loop header
LB: loop body
LE: loop exit
PB: predicated region body
PF: predicated region fallthrough
CT: control target
= control target key end

     0   :  { %9 = vsyncpa [#allocation3], 0  ;;  %s570_s0 = inlined_call_operand.hbm [shape: f32[4,128], index: 0, kind: input, shape index: {}]   ;;  %s571_s1 = inlined_call_operand.vmem [shape: f32[1,128], index: 1, kind: input, shape index: {}]   ;;  %s572_s2 = inlined_call_operand.vmem [shape: f32[1,128], index: 2, kind: input, shape index: {}]   ;;  %s573_s3 = inlined_call_operand.hbm [shape: f32[128,128], index: 3, kind: input, shape index: {}]   ;;  %s574_s4 = inlined_call_operand.hbm [shape: f32[4,128], index: 4, kind: output, shape index: {}]  }
   0x1   :  { %10 = vsyncpa [#allocation6], 0 }
   0x2   :  { %11 = vsyncpa [#allocation4], 0  ;;  %s488_s15 = smov [#allocation2]   ;;  %s489_s17 = smov [#allocation5]  }
   0x3   :  { %s18_s16 = sshll.u32 %s488_s15, 4  ;;  %s31_s18 = sshll.u32 %s489_s17, 4  ;;  %s19_s16 = int_to_ptr.vmem [resolvable:$true] %s18_s16  ;;  %s521_s18 = int_to_ptr.vmem [resolvable:$true] %s31_s18 }
   0x4   :  { %s416_s21 = scalar_lea.hbm %s570_s0, 64 }
   0x5   :  { %p417_p0 = scmp.ne.s32.totalorder %s570_s0, %s416_s21  ;;  %p420_p1 = scmp.lt.u32.totalorder %s416_s21, %s570_s0 }
   0x7   :  { %p422_p2 = pnand %p420_p1, %p417_p0 }
   0x9   :  { %425 = shalt.err (!%p422_p2)
}
   0xa   :  { %s426_s26 = scalar_lea.vmem %s19_s16, 64  ;;  %p431_p4 = scmp.lt.s32.totalorder %s19_s16, %s19_s16 }
   0xb   :  { %p427_p3 = scmp.ne.s32.totalorder %s19_s16, %s426_s26  ;;  %p432_p5 = scmp.lt.s32.totalorder %s426_s26, %s426_s26 }
   0xd   :  { %p433_p6 = por %p432_p5, %p431_p4 }
   0xf   :  { %p434_p7 = pnand %p433_p6, %p427_p3 }
  0x11   :  { %437 = shalt.err (!%p434_p7)
}
  0x12   :  { %21 = dma.hbm_to_vmem [thread:$0]  %s570_s0, 64, %s19_s16, [#allocation3]  }
  0x13   :  { %s438_s5 = scalar_lea.hbm %s573_s3, 2048 }
  0x14   :  { %p439_p8 = scmp.ne.s32.totalorder %s573_s3, %s438_s5  ;;  %p442_p9 = scmp.lt.u32.totalorder %s438_s5, %s573_s3 }
  0x16   :  { %p444_p10 = pnand %p442_p9, %p439_p8 }
  0x18   :  { %447 = shalt.err (!%p444_p10)
}
  0x19   :  { %s448_s10 = scalar_lea.vmem %s521_s18, 2048  ;;  %p453_p12 = scmp.lt.s32.totalorder %s521_s18, %s521_s18 }
  0x1a   :  { %p449_p11 = scmp.ne.s32.totalorder %s521_s18, %s448_s10  ;;  %p454_p13 = scmp.lt.s32.totalorder %s448_s10, %s448_s10 }
  0x1c   :  { %p455_p0 = por %p454_p13, %p453_p12 }
  0x1e   :  { %p456_p1 = pnand %p455_p0, %p449_p11 }
  0x20   :  { %459 = shalt.err (!%p456_p1)
}
  0x21   :  { %s490_s0 = smov 128   ;;  %s491_s11 = smov 8  }
  0x22   :  { %37 = dma.hbm_to_vmem [thread:$0]  %s573_s3, 2048, %s521_s18, [#allocation6], %s490_s0, %s490_s0, %s491_s11  }
  0x23   :  { %482 = dma.done.wait [#allocation3], 64  }
  0x24   :  { %483 = vsyncadd [#allocation3], 4294967232 }
  0x25   :  { %484 = dma.done.wait [#allocation6], 2048  }
  0x26   :  { %485 = vsyncadd [#allocation6], 4294965248  ;;  %v492_v0 = vmov 0.0|0.0   ;;  %vm493_vm0 = vmmov 0   ;;  %v494_v1 = vmov 0.0   ;;  %v45_v2 = vld [vmem:[#allocation5] sm:$0xff] }
  0x27   :  { %356 = vmatprep.subr.bf16.mxu0 %v492_v0  ;;  %318 = vmatprep.mubr.msk.f32.mxu0 %vm493_vm0, %v494_v1  ;;  %v46_v3 = vld [vmem:[#allocation5 + $0x8] sm:$0xff]  ;;  %v47_v4 = vld [vmem:[#allocation5 + $0x10] sm:$0xff]  ;;  %v48_v6 = vld [vmem:[#allocation5 + $0x18] sm:$0xff]  ;;  %s495_s17 = smov [#allocation7]  }
  0x28   :  { %380 = vmatprep.subr.bf16.mxu1 %v492_v0  ;;  %353 = vmatprep.mubr.msk.f32.mxu1 %vm493_vm0, %v494_v1  ;;  %v357_v5 = vpack.c.bf16 %v46_v3, %v45_v2  ;;  %v360_v7 = vpack.c.bf16 %v48_v6, %v47_v4  ;;  %v49_v8 = vld [vmem:[#allocation5 + $0x20] sm:$0xff]  ;;  %v50_v9 = vld [vmem:[#allocation5 + $0x28] sm:$0xff]  ;;  %v51_v11 = vld [vmem:[#allocation5 + $0x30] sm:$0xff]  ;;  %s240_s18 = sshll.u32 %s495_s17, 4  ;;  %s241_s18 = int_to_ptr.vmem [resolvable:$true] %s240_s18 }
  0x29   :  { %v363_v10 = vpack.c.bf16 %v50_v9, %v49_v8  ;;  %v52_v12 = vld [vmem:[#allocation5 + $0x38] sm:$0xff]  ;;  %v53_v14 = vld [vmem:[#allocation5 + $0x40] sm:$0xff]  ;;  %v54_v15 = vld [vmem:[#allocation5 + $0x48] sm:$0xff]  ;;  %s460_s19 = scalar_lea.vmem %s241_s18, 64  ;;  %p465_p3 = scmp.lt.s32.totalorder %s241_s18, %s241_s18 }
  0x2a   :  { %358 = vmatpush3.bf16.msra.mxu0 %v357_v5  ;;  %382 = vmatpush3.bf16.msra.mxu1 %v357_v5  ;;  %v366_v13 = vpack.c.bf16 %v52_v12, %v51_v11  ;;  %v369_v16 = vpack.c.bf16 %v54_v15, %v53_v14  ;;  %v55_v17 = vld [vmem:[#allocation5 + $0x50] sm:$0xff]  ;;  %v56_v18 = vld [vmem:[#allocation5 + $0x58] sm:$0xff]  ;;  %v57_v20 = vld [vmem:[#allocation5 + $0x60] sm:$0xff]  ;;  %p461_p2 = scmp.ne.s32.totalorder %s241_s18, %s460_s19  ;;  %p466_p4 = scmp.lt.s32.totalorder %s460_s19, %s460_s19 }
  0x2b   :  { %359 = vmatprep.subr.bf16.mxu0 %v492_v0  ;;  %383 = vmatprep.subr.bf16.mxu1 %v492_v0  ;;  %v372_v19 = vpack.c.bf16 %v56_v18, %v55_v17  ;;  %v58_v21 = vld [vmem:[#allocation5 + $0x68] sm:$0xff]  ;;  %v59_v23 = vld [vmem:[#allocation5 + $0x70] sm:$0xff]  ;;  %v60_v24 = vld [vmem:[#allocation5 + $0x78] sm:$0xff] }
  0x2c   :  { %v375_v22 = vpack.c.bf16 %v58_v21, %v57_v20  ;;  %v378_v25 = vpack.c.bf16 %v60_v24, %v59_v23  ;;  %v44_v26 = vld [vmem:[#allocation2] sm:$0xf]  ;;  %p467_p5 = por %p466_p4, %p465_p3 }
  0x2d   :  { %v250_v41 = vld [vmem:[%s571_s1] ss:$0 sm:$0xff] }
  0x2e   :  { %361 = vmatpush3.bf16.msra.mxu0 %v360_v7  ;;  %385 = vmatpush3.bf16.msra.mxu1 %v360_v7  ;;  %v251_v44 = vld [vmem:[%s572_s2] ss:$0 sm:$0xff]  ;;  %p468_p6 = pnand %p467_p5, %p461_p2 }
  0x2f   :  { %362 = vmatprep.subr.bf16.mxu0 %v492_v0  ;;  %386 = vmatprep.subr.bf16.mxu1 %v492_v0 }
  0x32   :  { %364 = vmatpush3.bf16.msra.mxu0 %v363_v10  ;;  %388 = vmatpush3.bf16.msra.mxu1 %v363_v10 }
  0x33   :  { %365 = vmatprep.subr.bf16.mxu0 %v492_v0  ;;  %389 = vmatprep.subr.bf16.mxu1 %v492_v0 }
  0x36   :  { %367 = vmatpush3.bf16.msra.mxu0 %v366_v13  ;;  %391 = vmatpush3.bf16.msra.mxu1 %v366_v13 }
  0x37   :  { %368 = vmatprep.subr.bf16.mxu0 %v492_v0  ;;  %392 = vmatprep.subr.bf16.mxu1 %v492_v0 }
  0x3a   :  { %370 = vmatpush3.bf16.msra.mxu0 %v369_v16  ;;  %394 = vmatpush3.bf16.msra.mxu1 %v369_v16 }
  0x3b   :  { %371 = vmatprep.subr.bf16.mxu0 %v492_v0  ;;  %395 = vmatprep.subr.bf16.mxu1 %v492_v0 }
  0x3e   :  { %373 = vmatpush3.bf16.msra.mxu0 %v372_v19  ;;  %397 = vmatpush3.bf16.msra.mxu1 %v372_v19 }
  0x3f   :  { %374 = vmatprep.subr.bf16.mxu0 %v492_v0  ;;  %398 = vmatprep.subr.bf16.mxu1 %v492_v0 }
  0x42   :  { %376 = vmatpush3.bf16.msra.mxu0 %v375_v22  ;;  %400 = vmatpush3.bf16.msra.mxu1 %v375_v22 }
  0x43   :  { %377 = vmatprep.subr.bf16.mxu0 %v492_v0  ;;  %401 = vmatprep.subr.bf16.mxu1 %v492_v0 }
  0x46   :  { %379 = vmatpush3.bf16.msra.mxu0 %v378_v25  ;;  %403 = vmatpush3.bf16.msra.mxu1 %v378_v25 }
  0x49   :  { %319 = vmatmul.mubr.f32.vlgmr.msra.gmra.mrb[0].mxu0 %v44_v26 }
 0x11c   :  { %v127_v27 = vpop.f32.mrb[0].mxu0 }
 0x11d   :  { %v132_v28 = vmul.f32 0.03125, %v127_v27  ;;  %v320_v29 = vpop.f32.mrb[1].mxu0 }
 0x11f   :  { %v133_v30 = vsub.f32 %v44_v26, %v132_v28 }
 0x121   :  { %v134_v31 = vmul.f32 %v133_v30, %v133_v30 }
 0x123   :  { %354 = vmatmul.mubr.f32.vlgmr.msra.gmra.mrb[0].mxu1 %v134_v31 }
 0x1f6   :  { %v201_v32 = vpop.f32.mrb[0].mxu1 }
 0x1f7   :  { %v206_v33 = vmul.f32 0.032258064, %v201_v32  ;;  %v355_v34 = vpop.f32.mrb[1].mxu1 }
 0x1f9   :  { %412 = vrsqrt.f32 %v206_v33  ;;  %vm209_vm1 = vcmp.eq.f32.partialorder %v206_v33, inf  ;;  %v212_v37 = vand.u32 2147483648, %v206_v33  ;;  %vm211_vm2 = vcmp.eq.f32.partialorder %v206_v33, 0.0 }
 0x203   :  { %v413_v35 = vpop.eup %412 }
 0x204   :  { %v208_v36 = vmul.f32 %v413_v35, %v206_v33 }
 0x206   :  { %v210_v38 = vsel %vm209_vm1, %v206_v33, %v208_v36 }
 0x207   :  { %v213_v39 = vsel %vm211_vm2, %v212_v37, %v210_v38 }
 0x208   :  { %v214_v40 = vadd.f32 1e-06, %v213_v39 }
 0x20a   :  { %414 = vrcp.f32 %v214_v40 }
 0x214   :  { %v415_v42 = vpop.eup %414 }
 0x215   :  { %v224_v43 = vmul.f32 %v415_v42, %v250_v41 }
 0x217   :  { %v225_v45 = vmul.f32 %v224_v43, %v133_v30 }
 0x219   :  { %v232_v46 = vadd.f32 %v251_v44, %v225_v45 }
 0x21b   :  { %233 = vst [vmem:[#allocation7] sm:$0xf] %v232_v46 }
 0x21c   :  { %471 = shalt.err (!%p468_p6)
}
 0x21d   :  { %s472_s21 = scalar_lea.hbm %s574_s4, 64 }
 0x21e   :  { %p473_p7 = scmp.ne.s32.totalorder %s574_s4, %s472_s21  ;;  %p476_p8 = scmp.lt.u32.totalorder %s472_s21, %s574_s4 }
 0x220   :  { %p478_p9 = pnand %p476_p8, %p473_p7 }
 0x222   :  { %481 = shalt.err (!%p478_p9)
}
 0x223   :  { %243 = dma.vmem_to_hbm [thread:$0]  %s241_s18, 64, %s574_s4, [#allocation4]  }
 0x224   :  { %486 = dma.done.wait [#allocation4], 64  }
 0x225   :  { %487 = vsyncadd [#allocation4], 4294967232 }
 0x226   :  { %247 = vsyncpa [#allocation3], 1 }
 0x227   :  { %248 = vsyncpa [#allocation6], 1 }
 0x228   :  { %249 = vsyncpa [#allocation4], 1 }

</bundles_post_ra>
